<compile_context>
chip_gen: v6e
topology: v6e:2x2x1
jax: 0.10.0
libtpu: 0.0.40
codegen_flags: <defaults>
</compile_context>

<pallas_src>
import jax
import jax.numpy as jnp
from jax.experimental import pallas as pl
from jax.experimental.pallas import tpu as pltpu

LN_EPS = 1e-5          # PyTorch nn.LayerNorm default
_NEG_BIG = -1e30       # fill for padded vocab columns (exp() underflows to 0)


def _round_up(x, m):
    return ((x + m - 1) // m) * m


def _vmem_limit(nbytes):
    # Explicit scoped-VMEM budget: estimate + headroom, floor 32 MiB, capped at
    # 48 MiB so it stays inside v7x's 64 MiB physical VMEM.
    return int(min(max(nbytes + (4 << 20), 32 << 20), 48 << 20))


# ---------------------------------------------------------------------------
# Kernel 1: residual add + LayerNorm   (norm1 / norm2 in Model.encode)
#   out = LayerNorm(x + y) * gamma + beta
# ---------------------------------------------------------------------------
def _res_ln_kernel(x_ref, y_ref, g_ref, b_ref, o_ref):
    x = x_ref[...].astype(jnp.float32) + y_ref[...].astype(jnp.float32)
    mean = jnp.mean(x, axis=-1, keepdims=True)
    xc = x - mean
    var = jnp.mean(xc * xc, axis=-1, keepdims=True)     # biased var (torch LN)
    xn = xc * jax.lax.rsqrt(var + LN_EPS)
    o_ref[...] = (xn * g_ref[...] + b_ref[...]).astype(o_ref.dtype)


def residual_layernorm(x, y, gamma, beta, *, tile_rows=512):
    """x, y: (R, D) f32; gamma, beta: (1, D) f32  ->  (R, D) f32."""
    R, D = x.shape
    tile = min(tile_rows, _round_up(R, 8))   # big tiles, but never > needed
    Rp = _round_up(R, tile)
    if Rp != R:                              # pad rows instead of asserting
        pad = ((0, Rp - R), (0, 0))
        x = jnp.pad(x, pad)
        y = jnp.pad(y, pad)

    nbytes = 6 * tile * D * 4 + 4 * D * 4    # 3 double-buffered (tile,D) blocks
    out = pl.pallas_call(
        _res_ln_kernel,
        out_shape=jax.ShapeDtypeStruct((Rp, D), jnp.float32),
        grid_spec=pltpu.PrefetchScalarGridSpec(
            num_scalar_prefetch=0,
            grid=(Rp // tile,),
            in_specs=[
                pl.BlockSpec((tile, D), lambda i: (i, 0)),
                pl.BlockSpec((tile, D), lambda i: (i, 0)),
                pl.BlockSpec((1, D), lambda i: (0, 0)),
                pl.BlockSpec((1, D), lambda i: (0, 0)),
            ],
            out_specs=pl.BlockSpec((tile, D), lambda i: (i, 0)),
        ),
        compiler_params=pltpu.CompilerParams(
            dimension_semantics=("parallel",),
            vmem_limit_bytes=_vmem_limit(nbytes),
        ),
    )(x, y, gamma, beta)
    return out[:R] if Rp != R else out


# ---------------------------------------------------------------------------
# Kernel 2a: fused decode head, pass 1 (norm3 + vocab matmul + online lse)
#   h    = LayerNorm(dec_hidden + new_dec_hidden)      (f32, once per row tile)
#   pred = h @ W[:, vtile] + b[vtile]                   (bf16 MXU, f32 accum)
#   running (m, l) online-logsumexp over vocab tiles -> lse per row
# Kernel 2b: pass 2   logp = pred - lse   (== log_softmax(pred), the +1e-20 of
#   the reference is a numerical no-op in f32 and is dropped)
# ---------------------------------------------------------------------------
def _head_pred_lse_kernel(x_ref, y_ref, g_ref, b_ref, w_ref, wb_ref,
                          pred_ref, lse_ref, yn_ref, m_ref, l_ref):
    j = pl.program_id(1)

    @pl.when(j == 0)
    def _():
        x = x_ref[...].astype(jnp.float32) + y_ref[...].astype(jnp.float32)
        mean = jnp.mean(x, axis=-1, keepdims=True)
        xc = x - mean
        var = jnp.mean(xc * xc, axis=-1, keepdims=True)
        xn = xc * jax.lax.rsqrt(var + LN_EPS)
        yn_ref[...] = (xn * g_ref[...] + b_ref[...]).astype(yn_ref.dtype)
        m_ref[...] = jnp.full(m_ref.shape, -jnp.inf, jnp.float32)
        l_ref[...] = jnp.zeros(l_ref.shape, jnp.float32)

    # vocab-tile projection on the MXU (bf16 inputs, f32 accumulation)
    pred = jnp.dot(yn_ref[...], w_ref[...],
                   preferred_element_type=jnp.float32) + wb_ref[...]
    pred_ref[...] = pred

    # online logsumexp update
    m_prev = m_ref[...]
    m_new = jnp.maximum(m_prev, jnp.max(pred, axis=-1, keepdims=True))
    l_ref[...] = (l_ref[...] * jnp.exp(m_prev - m_new)
                  + jnp.sum(jnp.exp(pred - m_new), axis=-1, keepdims=True))
    m_ref[...] = m_new

    @pl.when(j == pl.num_programs(1) - 1)
    def _():
        lse_ref[...] = m_ref[...] + jnp.log(l_ref[...])


def _normalize_kernel(pred_ref, lse_ref, o_ref):
    o_ref[...] = pred_ref[...] - lse_ref[...]


def decode_head(x, y, gamma, beta, w, wb, *, tile_m=256, tile_n=1024,
                matmul_dtype=jnp.bfloat16):
    """x, y: (R, D); gamma/beta: (1, D); w: (D, V); wb: (1, V) -> logp (R, V)."""
    R, D = x.shape
    V = w.shape[1]
    dsz = jnp.dtype(matmul_dtype).itemsize

    tm = min(tile_m, _round_up(R, 8))
    Rp = _round_up(R, tm)
    tn = min(tile_n, _round_up(V, 128))
    Vp = _round_up(V, tn)

    if Rp != R:
        pad = ((0, Rp - R), (0, 0))
        x = jnp.pad(x, pad)
        y = jnp.pad(y, pad)
    if Vp != V:
        w = jnp.pad(w, ((0, 0), (0, Vp - V)))
        wb = jnp.pad(wb, ((0, 0), (0, Vp - V)), constant_values=_NEG_BIG)
    w = w.astype(matmul_dtype)
    wb = wb.astype(jnp.float32)

    nbytes_a = (4 * tm * D * 4 + 4 * D * 4            # x, y blocks (2-buf) + g,b
                + 2 * D * tn * dsz + 2 * tn * 4       # W tile + bias (2-buf)
                + 2 * tm * tn * 4 + 2 * tm * 4        # pred + lse outputs
                + tm * D * dsz + 2 * tm * 4)          # scratch
    pred, lse = pl.pallas_call(
        _head_pred_lse_kernel,
        out_shape=(jax.ShapeDtypeStruct((Rp, Vp), jnp.float32),
                   jax.ShapeDtypeStruct((Rp, 1), jnp.float32)),
        grid_spec=pltpu.PrefetchScalarGridSpec(
            num_scalar_prefetch=0,
            grid=(Rp // tm, Vp // tn),
            in_specs=[
                pl.BlockSpec((tm, D), lambda i, j: (i, 0)),
                pl.BlockSpec((tm, D), lambda i, j: (i, 0)),
                pl.BlockSpec((1, D), lambda i, j: (0, 0)),
                pl.BlockSpec((1, D), lambda i, j: (0, 0)),
                pl.BlockSpec((D, tn), lambda i, j: (0, j)),
                pl.BlockSpec((1, tn), lambda i, j: (0, j)),
            ],
            out_specs=(
                pl.BlockSpec((tm, tn), lambda i, j: (i, j)),
                pl.BlockSpec((tm, 1), lambda i, j: (i, 0)),
            ),
            scratch_shapes=[
                pltpu.VMEM((tm, D), matmul_dtype),    # post-LN activations
                pltpu.VMEM((tm, 1), jnp.float32),     # running max m
                pltpu.VMEM((tm, 1), jnp.float32),     # running sum l
            ],
        ),
        compiler_params=pltpu.CompilerParams(
            dimension_semantics=("parallel", "arbitrary"),
            vmem_limit_bytes=_vmem_limit(nbytes_a),
        ),
    )(x, y, gamma, beta, w, wb)

    nbytes_b = 4 * tm * tn * 4 + 4 * tm * 4
    logp = pl.pallas_call(
        _normalize_kernel,
        out_shape=jax.ShapeDtypeStruct((Rp, Vp), jnp.float32),
        grid_spec=pltpu.PrefetchScalarGridSpec(
            num_scalar_prefetch=0,
            grid=(Rp // tm, Vp // tn),
            in_specs=[
                pl.BlockSpec((tm, tn), lambda i, j: (i, j)),
                pl.BlockSpec((tm, 1), lambda i, j: (i, 0)),
            ],
            out_specs=pl.BlockSpec((tm, tn), lambda i, j: (i, j)),
        ),
        compiler_params=pltpu.CompilerParams(
            dimension_semantics=("parallel", "parallel"),
            vmem_limit_bytes=_vmem_limit(nbytes_b),
        ),
    )(pred, lse)

    if Rp != R or Vp != V:
        logp = logp[:R, :V]
    return logp


# ---------------------------------------------------------------------------
# Model wrapper (JAX glue around the Pallas kernels)
# ---------------------------------------------------------------------------
class PallasModelHead:
    def __init__(self, key, *, token_num, ent_num, rel_num, model_dim,
                 ent_dim, rel_dim):
        ks = jax.random.split(key, 8)
        self.model_dim = model_dim
        self.token_num = token_num
        # nn.Embedding(ent_num+1, ent_dim) / nn.Embedding(rel_num+1, rel_dim)
        self.ent_embedding = jax.random.normal(ks[0], (ent_num + 1, ent_dim), jnp.float32)
        self.rel_embedding = jax.random.normal(ks[1], (rel_num + 1, rel_dim), jnp.float32)
        # nn.Linear(model_dim, token_num)
        lim = 1.0 / (model_dim ** 0.5)
        self.lin_w = jax.random.uniform(ks[2], (model_dim, token_num), jnp.float32, -lim, lim)
        self.lin_b = jax.random.uniform(ks[3], (1, token_num), jnp.float32, -lim, lim)
        # nn.LayerNorm(model_dim) x3 — torch default init (ones / zeros)
        self.n1_g = jnp.ones((1, model_dim), jnp.float32)
        self.n1_b = jnp.zeros((1, model_dim), jnp.float32)
        self.n2_g = jnp.ones((1, model_dim), jnp.float32)
        self.n2_b = jnp.zeros((1, model_dim), jnp.float32)
        self.n3_g = jnp.ones((1, model_dim), jnp.float32)
        self.n3_b = jnp.zeros((1, model_dim), jnp.float32)

    def forward(self, src_hidden, new_src_hidden, doc_hidden, new_doc_hidden,
                dec_hidden, new_dec_hidden, graph, *, matmul_dtype=jnp.bfloat16):
        B, Ssrc, D = src_hidden.shape
        _, Sdoc, _ = doc_hidden.shape
        _, T, _ = dec_hidden.shape
        V = self.token_num

        # graph embedding lookups (glue): graph is (B, G, 3) int ids
        head_emb = jnp.take(self.ent_embedding, graph[:, :, 0], axis=0)
        rel_emb = jnp.take(self.rel_embedding, graph[:, :, 1], axis=0)
        tail_emb = jnp.take(self.ent_embedding, graph[:, :, 2], axis=0)

        # norm1 / norm2 : residual + LayerNorm (Pallas)
        memory = residual_layernorm(
            src_hidden.reshape(B * Ssrc, D), new_src_hidden.reshape(B * Ssrc, D),
            self.n1_g, self.n1_b).reshape(B, Ssrc, D)
        doc_out = residual_layernorm(
            doc_hidden.reshape(B * Sdoc, D), new_doc_hidden.reshape(B * Sdoc, D),
            self.n2_g, self.n2_b).reshape(B, Sdoc, D)

        # norm3 + linear + log_softmax (vocab-tiled Pallas decode head, do_copy=False)
        logp = decode_head(
            dec_hidden.reshape(B * T, D), new_dec_hidden.reshape(B * T, D),
            self.n3_g, self.n3_b, self.lin_w, self.lin_b,
            matmul_dtype=matmul_dtype).reshape(B, T, V)

        return logp, memory, doc_out, head_emb, rel_emb, tail_emb


# ---------------------------------------------------------------------------
# Pure-JAX reference for correctness checking
# ---------------------------------------------------------------------------
def _ref_ln(x, g, b):
    mean = jnp.mean(x, axis=-1, keepdims=True)
    var = jnp.mean((x - mean) ** 2, axis=-1, keepdims=True)
    return (x - mean) * jax.lax.rsqrt(var + LN_EPS) * g + b


def _ref_forward(m, src_h, nsrc_h, doc_h, ndoc_h, dec_h, ndec_h):
    memory = _ref_ln(src_h + nsrc_h, m.n1_g[0], m.n1_b[0])
    doc = _ref_ln(doc_h + ndoc_h, m.n2_g[0], m.n2_b[0])
    h = _ref_ln(dec_h + ndec_h, m.n3_g[0], m.n3_b[0])
    pred = h @ m.lin_w + m.lin_b[0]
    logp = jax.nn.log_softmax(pred + 1e-20, axis=-1)
    return logp, memory, doc


if __name__ == "__main__":
    # Small shapes consistent with the module's forward; D and V kept as
    # multiples of 128 so the lane axis is dense.
    B, S_SRC, S_DOC, T_TGT = 2, 16, 16, 8
    MODEL_DIM = 128
    TOKEN_NUM = 256
    ENT_NUM, REL_NUM, G = 10, 5, 4

    key = jax.random.PRNGKey(0)
    kp, k1, k2, k3, k4, k5, k6, k7 = jax.random.split(key, 8)

    model = PallasModelHead(kp, token_num=TOKEN_NUM, ent_num=ENT_NUM,
                            rel_num=REL_NUM, model_dim=MODEL_DIM,
                            ent_dim=MODEL_DIM, rel_dim=MODEL_DIM)

    src_hidden = jax.random.normal(k1, (B, S_SRC, MODEL_DIM), jnp.float32)
    new_src_hidden = jax.random.normal(k2, (B, S_SRC, MODEL_DIM), jnp.float32)
    doc_hidden = jax.random.normal(k3, (B, S_DOC, MODEL_DIM), jnp.float32)
    new_doc_hidden = jax.random.normal(k4, (B, S_DOC, MODEL_DIM), jnp.float32)
    dec_hidden = jax.random.normal(k5, (B, T_TGT, MODEL_DIM), jnp.float32)
    new_dec_hidden = jax.random.normal(k6, (B, T_TGT, MODEL_DIM), jnp.float32)
    graph = jax.random.randint(k7, (B, G, 3), 0, min(ENT_NUM, REL_NUM) + 1)

    # default (bf16 matmul) path
    logp, memory, doc_out, he, re, te = model.forward(
        src_hidden, new_src_hidden, doc_hidden, new_doc_hidden,
        dec_hidden, new_dec_hidden, graph)
    jax.block_until_ready((logp, memory, doc_out, he, re, te))

    # pure-JAX reference
    logp_r, mem_r, doc_r = _ref_forward(model, src_hidden, new_src_hidden,
                                        doc_hidden, new_doc_hidden,
                                        dec_hidden, new_dec_hidden)

    # residual+LN kernels are pure f32 -> tight tolerance
    assert jnp.allclose(memory, mem_r, atol=1e-4, rtol=1e-4)
    assert jnp.allclose(doc_out, doc_r, atol=1e-4, rtol=1e-4)
    # bf16 matmul path: looser tolerance; rows must still (log-)sum to ~0
    assert jnp.allclose(logp, logp_r, atol=5e-2, rtol=5e-2)
    assert jnp.allclose(jax.scipy.special.logsumexp(logp, axis=-1), 0.0, atol=1e-4)

    # f32 matmul path of the same kernels: tight check of the kernel math
    logp_f32 = decode_head(
        dec_hidden.reshape(B * T_TGT, MODEL_DIM),
        new_dec_hidden.reshape(B * T_TGT, MODEL_DIM),
        model.n3_g, model.n3_b, model.lin_w, model.lin_b,
        matmul_dtype=jnp.float32).reshape(B, T_TGT, TOKEN_NUM)
    jax.block_until_ready(logp_f32)
    assert jnp.allclose(logp_f32, logp_r, atol=1e-4, rtol=1e-4)

    print("KERNEL_OK")
</pallas_src>

<mosaic_0001>
module attributes {stable_mosaic.version = 11 : i64} {
  func.func @_res_ln_kernel(%arg0: i32, %arg1: memref<32x128xf32, #tpu.memory_space<vmem>>, %arg2: memref<32x128xf32, #tpu.memory_space<vmem>>, %arg3: memref<1x128xf32, #tpu.memory_space<vmem>>, %arg4: memref<1x128xf32, #tpu.memory_space<vmem>>, %arg5: memref<32x128xf32, #tpu.memory_space<vmem>>) attributes {dimension_semantics = [#tpu.dimension_semantics<parallel>], iteration_bounds = array<i64: 1>, scalar_prefetch = 0 : i64, scratch_operands = 0 : i64, tpu.core_type = #tpu.core_type<tc>, window_params = [{transform_indices = @transform_0, window_bounds = array<i64: 32, 128>}, {transform_indices = @transform_1, window_bounds = array<i64: 32, 128>}, {pipeline_mode = #tpu.pipeline_mode<synchronous>, transform_indices = @transform_2, window_bounds = array<i64: 1, 128>}, {pipeline_mode = #tpu.pipeline_mode<synchronous>, transform_indices = @transform_3, window_bounds = array<i64: 1, 128>}, {transform_indices = @transform_4, window_bounds = array<i64: 32, 128>}]} {
    %c0 = arith.constant 0 : index
    %c0_0 = arith.constant 0 : index
    %0 = vector.load %arg1[%c0, %c0_0] : memref<32x128xf32, #tpu.memory_space<vmem>>, vector<32x128xf32>
    %c0_1 = arith.constant 0 : index
    %c0_2 = arith.constant 0 : index
    %1 = vector.load %arg2[%c0_1, %c0_2] : memref<32x128xf32, #tpu.memory_space<vmem>>, vector<32x128xf32>
    %2 = arith.addf %0, %1 : vector<32x128xf32>
    %cst = arith.constant dense<0.000000e+00> : vector<32xf32>
    %3 = vector.multi_reduction <add>, %2, %cst [1] : vector<32x128xf32> to vector<32xf32>
    %4 = vector.shape_cast %3 : vector<32xf32> to vector<32x1xf32>
    %cst_3 = arith.constant 1.280000e+02 : f32
    %5 = vector.broadcast %cst_3 : f32 to vector<32x1xf32>
    %6 = arith.divf %4, %5 : vector<32x1xf32>
    %7 = vector.broadcast %6 : vector<32x1xf32> to vector<32x128xf32>
    %8 = arith.subf %2, %7 : vector<32x128xf32>
    %9 = arith.mulf %8, %8 : vector<32x128xf32>
    %cst_4 = arith.constant dense<0.000000e+00> : vector<32xf32>
    %10 = vector.multi_reduction <add>, %9, %cst_4 [1] : vector<32x128xf32> to vector<32xf32>
    %11 = vector.shape_cast %10 : vector<32xf32> to vector<32x1xf32>
    %cst_5 = arith.constant 1.280000e+02 : f32
    %12 = vector.broadcast %cst_5 : f32 to vector<32x1xf32>
    %13 = arith.divf %11, %12 : vector<32x1xf32>
    %cst_6 = arith.constant 9.99999974E-6 : f32
    %14 = vector.broadcast %cst_6 : f32 to vector<32x1xf32>
    %15 = arith.addf %13, %14 : vector<32x1xf32>
    %16 = math.rsqrt %15 : vector<32x1xf32>
    %17 = vector.broadcast %16 : vector<32x1xf32> to vector<32x128xf32>
    %18 = arith.mulf %8, %17 : vector<32x128xf32>
    %c0_7 = arith.constant 0 : index
    %c0_8 = arith.constant 0 : index
    %19 = vector.load %arg3[%c0_7, %c0_8] : memref<1x128xf32, #tpu.memory_space<vmem>>, vector<1x128xf32>
    %20 = vector.broadcast %19 : vector<1x128xf32> to vector<32x128xf32>
    %21 = arith.mulf %18, %20 : vector<32x128xf32>
    %c0_9 = arith.constant 0 : index
    %c0_10 = arith.constant 0 : index
    %22 = vector.load %arg4[%c0_9, %c0_10] : memref<1x128xf32, #tpu.memory_space<vmem>>, vector<1x128xf32>
    %23 = vector.broadcast %22 : vector<1x128xf32> to vector<32x128xf32>
    %24 = arith.addf %21, %23 : vector<32x128xf32>
    %c0_11 = arith.constant 0 : index
    %c0_12 = arith.constant 0 : index
    %25 = vector.load %arg5[%c0_11, %c0_12] : memref<32x128xf32, #tpu.memory_space<vmem>>, vector<32x128xf32>
    tpu.vector_store %arg5[%c0_11, %c0_12], %24 {strides = array<i32>} : memref<32x128xf32, #tpu.memory_space<vmem>>, vector<32x128xf32>,
    return
  }
  func.func @transform_0(%arg0: i32) -> (i32, i32) {
    %c0_i32 = arith.constant 0 : i32
    %c0_i32_0 = arith.constant 0 : i32
    return %arg0, %c0_i32 : i32, i32
  }
  func.func @transform_1(%arg0: i32) -> (i32, i32) {
    %c0_i32 = arith.constant 0 : i32
    %c0_i32_0 = arith.constant 0 : i32
    return %arg0, %c0_i32 : i32, i32
  }
  func.func @transform_2(%arg0: i32) -> (i32, i32) {
    %c0_i32 = arith.constant 0 : i32
    %c0_i32_0 = arith.constant 0 : i32
    %c0_i32_1 = arith.constant 0 : i32
    return %c0_i32, %c0_i32_0 : i32, i32
  }
  func.func @transform_3(%arg0: i32) -> (i32, i32) {
    %c0_i32 = arith.constant 0 : i32
    %c0_i32_0 = arith.constant 0 : i32
    %c0_i32_1 = arith.constant 0 : i32
    return %c0_i32, %c0_i32_0 : i32, i32
  }
  func.func @transform_4(%arg0: i32) -> (i32, i32) {
    %c0_i32 = arith.constant 0 : i32
    %c0_i32_0 = arith.constant 0 : i32
    return %arg0, %c0_i32 : i32, i32
  }
}

</mosaic_0001>

<bundles_post_ra>
// kernel: tpu_custom_call.1
= control target key start
LH: loop header
LB: loop body
LE: loop exit
PB: predicated region body
PF: predicated region fallthrough
CT: control target
= control target key end

     0   :  { %9 = vsyncpa [#allocation3], 0  ;;  %s282_s0 = inlined_call_operand.hbm [shape: f32[32,128], index: 0, kind: input, shape index: {}]   ;;  %s283_s1 = inlined_call_operand.hbm [shape: f32[32,128], index: 1, kind: input, shape index: {}]   ;;  %s284_s2 = inlined_call_operand.vmem [shape: f32[1,128], index: 2, kind: input, shape index: {}]   ;;  %s285_s3 = inlined_call_operand.vmem [shape: f32[1,128], index: 3, kind: input, shape index: {}]   ;;  %s286_s4 = inlined_call_operand.hbm [shape: f32[32,128], index: 4, kind: output, shape index: {}]  }
   0x1   :  { %10 = vsyncpa [#allocation6], 0 }
   0x2   :  { %11 = vsyncpa [#allocation4], 0  ;;  %s228_s15 = smov [#allocation2]  }
   0x3   :  { %s17_s16 = sshll.u32 %s228_s15, 4  ;;  %s18_s16 = int_to_ptr.vmem [resolvable:$true] %s17_s16 }
   0x4   :  { %s170_s17 = scalar_lea.vmem %s18_s16, 512  ;;  %p175_p1 = scmp.lt.s32.totalorder %s18_s16, %s18_s16 }
   0x5   :  { %p171_p0 = scmp.ne.s32.totalorder %s18_s16, %s170_s17  ;;  %p176_p2 = scmp.lt.s32.totalorder %s170_s17, %s170_s17 }
   0x7   :  { %p177_p3 = por %p176_p2, %p175_p1 }
   0x9   :  { %p178_p4 = pnand %p177_p3, %p171_p0 }
   0xb   :  { %181 = shalt.err (!%p178_p4)
}
   0xc   :  { %s229_s18 = smov 128   ;;  %s230_s19 = smov 8  }
   0xd   :  { %23 = dma.hbm_to_vmem [thread:$0]  %s282_s0, 512, %s18_s16, [#allocation3], %s229_s18, %s229_s18, %s230_s19  }
   0xe   :  { %s231_s22 = smov [#allocation5]  }
   0xf   :  { %s29_s23 = sshll.u32 %s231_s22, 4  ;;  %s30_s23 = int_to_ptr.vmem [resolvable:$true] %s29_s23 }
  0x10   :  { %s190_s24 = scalar_lea.vmem %s30_s23, 512  ;;  %p195_p6 = scmp.lt.s32.totalorder %s30_s23, %s30_s23 }
  0x11   :  { %p191_p5 = scmp.ne.s32.totalorder %s30_s23, %s190_s24  ;;  %p196_p7 = scmp.lt.s32.totalorder %s190_s24, %s190_s24 }
  0x13   :  { %p197_p8 = por %p196_p7, %p195_p6 }
  0x15   :  { %p198_p9 = pnand %p197_p8, %p191_p5 }
  0x17   :  { %201 = shalt.err (!%p198_p9)
}
  0x18   :  { %35 = dma.hbm_to_vmem [thread:$0]  %s283_s1, 512, %s30_s23, [#allocation6], %s229_s18, %s229_s18, %s230_s19  }
  0x19   :  { %222 = dma.done.wait [#allocation3], 512  }
  0x1a   :  { %223 = vsyncadd [#allocation3], 4294966784 }
  0x1b   :  { %224 = dma.done.wait [#allocation6], 512  }
  0x1c   :  { %225 = vsyncadd [#allocation6], 4294966784  ;;  %v46_v0 = vld [vmem:[#allocation2] sm:$0xff]  ;;  %v48_v2 = vld [vmem:[#allocation2 + $0x10] sm:$0xff]  ;;  %s232_s29 = smov [#allocation7]  }
  0x1d   :  { %v50_v1 = vld [vmem:[#allocation5] sm:$0xff]  ;;  %v52_v4 = vld [vmem:[#allocation5 + $0x10] sm:$0xff]  ;;  %v47_v5 = vld [vmem:[#allocation2 + $0x8] sm:$0xff] }
  0x1e   :  { %v54_v3 = vadd.f32 %v50_v1, %v46_v0  ;;  %v51_v6 = vld [vmem:[#allocation5 + $0x8] sm:$0xff]  ;;  %v56_v7 = vadd.f32 %v52_v4, %v48_v2  ;;  %v49_v8 = vld [vmem:[#allocation2 + $0x18] sm:$0xff]  ;;  %v147_v41 = vld [vmem:[%s284_s2] ss:$0 sm:$0xff]  ;;  %s134_s2 = sshll.u32 %s232_s29, 4  ;;  %s135_s2 = int_to_ptr.vmem [resolvable:$true] %s134_s2 }
  0x1f   :  { %v53_v9 = vld [vmem:[#allocation5 + $0x18] sm:$0xff]  ;;  %v55_v10 = vadd.f32 %v51_v6, %v47_v5  ;;  %v148_v43 = vld [vmem:[%s285_s3] ss:$0 sm:$0xff]  ;;  %s202_s3 = scalar_lea.vmem %s135_s2, 512  ;;  %p207_p11 = scmp.lt.s32.totalorder %s135_s2, %s135_s2 }
  0x20   :  { %58 = vadd.xlane.f32.xlu0 %v54_v3  ;;  %62 = vadd.xlane.f32.xlu1 %v56_v7  ;;  %v57_v11 = vadd.f32 %v53_v9, %v49_v8  ;;  %p203_p10 = scmp.ne.s32.totalorder %s135_s2, %s202_s3  ;;  %p208_p12 = scmp.lt.s32.totalorder %s202_s3, %s202_s3 }
  0x22   :  { %p209_p13 = por %p208_p12, %p207_p11 }
  0x24   :  { %60 = vadd.xlane.f32.xlu0 %v55_v10  ;;  %64 = vadd.xlane.f32.xlu1 %v57_v11  ;;  %p210_p0 = pnand %p209_p13, %p203_p10 }
  0xa9   :  { %v59_v12 = vpop.xlane.xlu0 %58  ;;  %v63_v14 = vpop.xlane.xlu1 %62 }
  0xaa   :  { %v67_v13 = vmul.f32 0.0078125, %v59_v12  ;;  %v69_v15 = vmul.f32 0.0078125, %v63_v14 }
  0xac   :  { %v71_v16 = vsub.f32 %v54_v3, %v67_v13  ;;  %v73_v17 = vsub.f32 %v56_v7, %v69_v15 }
  0xad   :  { %v61_v18 = vpop.xlane.xlu0 %60  ;;  %v65_v21 = vpop.xlane.xlu1 %64 }
  0xae   :  { %v68_v19 = vmul.f32 0.0078125, %v61_v18  ;;  %v75_v20 = vmul.f32 %v71_v16, %v71_v16  ;;  %v70_v22 = vmul.f32 0.0078125, %v65_v21  ;;  %v77_v24 = vmul.f32 %v73_v17, %v73_v17 }
  0xb0   :  { %v72_v23 = vsub.f32 %v55_v10, %v68_v19  ;;  %79 = vadd.xlane.f32.xlu0 %v75_v20  ;;  %v74_v25 = vsub.f32 %v57_v11, %v70_v22 }
  0xb2   :  { %v76_v26 = vmul.f32 %v72_v23, %v72_v23  ;;  %v78_v27 = vmul.f32 %v74_v25, %v74_v25 }
  0xb4   :  { %83 = vadd.xlane.f32.xlu0 %v77_v24  ;;  %81 = vadd.xlane.f32.xlu1 %v76_v26 }
  0xb8   :  { %85 = vadd.xlane.f32.xlu1 %v78_v27 }
 0x139   :  { %v80_v28 = vpop.xlane.xlu0 %79 }
 0x13a   :  { %v87_v29 = vmul.f32 0.0078125, %v80_v28 }
 0x13c   :  { %v91_v30 = vadd.f32 1e-05, %v87_v29 }
 0x13d   :  { %v82_v31 = vpop.xlane.xlu1 %81  ;;  %v84_v32 = vpop.xlane.xlu0 %83 }
 0x13e   :  { %154 = vrsqrt.f32 %v91_v30  ;;  %v88_v33 = vmul.f32 0.0078125, %v82_v31  ;;  %v89_v34 = vmul.f32 0.0078125, %v84_v32 }
 0x140   :  { %v92_v35 = vadd.f32 1e-05, %v88_v33  ;;  %v93_v36 = vadd.f32 1e-05, %v89_v34 }
 0x141   :  { %v86_v37 = vpop.xlane.xlu1 %85 }
 0x142   :  { %156 = vrsqrt.f32 %v92_v35  ;;  %v90_v38 = vmul.f32 0.0078125, %v86_v37 }
 0x143   :  { %158 = vrsqrt.f32 %v93_v36 }
 0x144   :  { %v94_v39 = vadd.f32 1e-05, %v90_v38 }
 0x146   :  { %160 = vrsqrt.f32 %v94_v39 }
 0x14b   :  { %v155_v40 = vpop.eup %154 }
 0x14c   :  { %v99_v42 = vmul.f32 %v155_v40, %v71_v16 }
 0x14e   :  { %v110_v44 = vmul.f32 %v147_v41, %v99_v42 }
 0x14f   :  { %v157_v45 = vpop.eup %156 }
 0x150   :  { %v159_v46 = vpop.eup %158  ;;  %v100_v47 = vmul.f32 %v157_v45, %v72_v23  ;;  %v121_v48 = vadd.f32 %v148_v43, %v110_v44 }
 0x151   :  { %v101_v49 = vmul.f32 %v159_v46, %v73_v17 }
 0x152   :  { %v111_v50 = vmul.f32 %v147_v41, %v100_v47  ;;  %125 = vst [vmem:[#allocation7] sm:$0xff] %v121_v48 }
 0x153   :  { %v161_v51 = vpop.eup %160  ;;  %v112_v52 = vmul.f32 %v147_v41, %v101_v49 }
 0x154   :  { %v102_v53 = vmul.f32 %v161_v51, %v74_v25  ;;  %v122_v54 = vadd.f32 %v148_v43, %v111_v50 }
 0x155   :  { %v123_v55 = vadd.f32 %v148_v43, %v112_v52 }
 0x156   :  { %v113_v56 = vmul.f32 %v147_v41, %v102_v53  ;;  %126 = vst [vmem:[#allocation7 + $0x8] sm:$0xff] %v122_v54 }
 0x157   :  { %127 = vst [vmem:[#allocation7 + $0x10] sm:$0xff] %v123_v55 }
 0x158   :  { %v124_v57 = vadd.f32 %v148_v43, %v113_v56 }
 0x15a   :  { %128 = vst [vmem:[#allocation7 + $0x18] sm:$0xff] %v124_v57 }
 0x15b   :  { %213 = shalt.err (!%p210_p0)
}
 0x15c   :  { %140 = dma.vmem_to_hbm [thread:$0]  %s135_s2, 512, %s286_s4, [#allocation4], %s229_s18, %s229_s18, %s230_s19  }
 0x15d   :  { %226 = dma.done.wait [#allocation4], 512  }
 0x15e   :  { %227 = vsyncadd [#allocation4], 4294966784 }
 0x15f   :  { %144 = vsyncpa [#allocation3], 1 }
 0x160   :  { %145 = vsyncpa [#allocation6], 1 }
 0x161   :  { %146 = vsyncpa [#allocation4], 1 }

</bundles_post_ra>
